<compile_context>
chip_gen: v5e
topology: v5e:2x2
jax: 0.10.0
libtpu: 0.0.40
codegen_flags: <defaults>
</compile_context>

<pallas_src>
import functools

import jax
import jax.numpy as jnp
from jax.experimental import pallas as pl
from jax.experimental.pallas import tpu as pltpu

# TODO(synk): `col_normalization` is not defined in the provided module; it is assumed to
# be per-column L2 normalization over the batch axis (dim=0): x / max(||x_col||_2, 1e-12).
_COL_NORM_EPS = 1e-12

_LANE = 128  # all layer widths are zero-padded to one 128-lane tile


def _apply_activation(h, activation):
    if activation == "tanh":
        return jnp.tanh(h)
    if activation == "relu":
        return jnp.maximum(h, 0.0)
    if activation == "leaky_relu":
        return jnp.where(h >= 0.0, h, 0.01 * h)
    if activation == "sigmoid":
        return jax.nn.sigmoid(h)
    return h  # 'linear' -> Identity (module default)


def _generator_kernel(gb, batch, n_hidden, activation, matmul_dtype,
                      scale_ref, x_ref, w_ref, b_ref, o_ref):
    """gb independent forward instances per grid step.

    scale_ref: (1, 1) SMEM            -- scaling_constant (runtime value)
    x_ref:     (gb, B, 128) VMEM f32  -- inputs, zero-padded to 128 lanes
    w_ref:     (L, 128, 128) VMEM     -- weight slab, pre-cast to matmul_dtype, zero-padded
    b_ref:     (L, 128) VMEM f32      -- bias slab, zero-padded
    o_ref:     (gb, B, 128) VMEM f32  -- lane-dense output (real columns [:output_size])
    """
    scale = scale_ref[0, 0]

    if gb == 1:
        h = x_ref[0]                                       # (B, 128)
    else:
        # batch % 8 == 0 is guaranteed by the wrapper, so this merge is tile-aligned.
        h = x_ref[...].reshape(gb * batch, _LANE)          # (gb*B, 128)

    for i in range(n_hidden):
        z = jnp.dot(h.astype(matmul_dtype), w_ref[i],
                    preferred_element_type=jnp.float32) + b_ref[i:i + 1, :]
        if gb == 1:
            sumsq = jnp.sum(z * z, axis=0, keepdims=True)                  # (1, 128)
            inv = scale / jnp.maximum(jnp.sqrt(sumsq), _COL_NORM_EPS)
            h = _apply_activation(z * inv, activation)
        else:
            # Per-instance column norm: reduce over the batch axis of each instance only.
            z3 = z.reshape(gb, batch, _LANE)
            sumsq = jnp.sum(z3 * z3, axis=1, keepdims=True)                # (gb, 1, 128)
            inv = scale / jnp.maximum(jnp.sqrt(sumsq), _COL_NORM_EPS)
            h = _apply_activation((z3 * inv).reshape(gb * batch, _LANE), activation)

    # Final layer on the MXU against the zero-padded (128,128) weight; padded output lanes
    # stay exactly 0 (zero weight rows/cols, zero bias padding) and the store is lane-dense.
    out = jnp.dot(h.astype(matmul_dtype), w_ref[n_hidden],
                  preferred_element_type=jnp.float32) + b_ref[n_hidden:n_hidden + 1, :]
    if gb == 1:
        o_ref[0] = out.astype(o_ref.dtype)
    else:
        o_ref[...] = out.reshape(gb, batch, _LANE).astype(o_ref.dtype)


def _pack_params(params, matmul_dtype):
    """Pack all weights/biases into one (L,128,128) weight slab and one (L,128) bias slab.

    Weights are pre-cast to matmul_dtype on the host (no per-layer in-kernel cast, half the
    slab DMA for bf16).  Biases stay f32 (they are added to the f32 accumulator).
    Zero padding of weight rows is a correctness invariant (see header comment).
    """
    n_layers = len(params)
    for w, _ in params:
        # TODO(synk): layer widths > 128 would require K/N tiling of the weight slab.
        assert w.shape[0] <= _LANE and w.shape[1] <= _LANE
    w_slab = jnp.zeros((n_layers, _LANE, _LANE), jnp.float32)
    b_slab = jnp.zeros((n_layers, _LANE), jnp.float32)
    for i, (w, b) in enumerate(params):
        w_slab = w_slab.at[i, :w.shape[0], :w.shape[1]].set(w.astype(jnp.float32))
        b_slab = b_slab.at[i, :b.shape[-1]].set(b.reshape(-1).astype(jnp.float32))
    return w_slab.astype(matmul_dtype), b_slab


def _choose_instance_block(G, batch, target):
    """Pick Gb (instances per grid step)."""
    if batch % 8 != 0:
        # TODO(synk): instance blocking needs batch % 8 == 0 for tile-aligned reshapes;
        # mask-padding the batch axis would lift this (zero-padded rows would corrupt the
        # column norm, so they must be excluded from the sum, not just zero-filled).
        return 1
    if G <= 1:
        return 1
    # Keep the blocked grid length >= 2 so the 'parallel' axis can split across both
    # v7x TensorCores.
    return max(1, min(target, -(-G // 2)))


def _vmem_limit_bytes(n_layers, rows, matmul_dtype):
    """Footprint-derived VMEM limit, clamped to v7x's 64 MiB physical VMEM per TC."""
    itemsize = jnp.dtype(matmul_dtype).itemsize
    slabs = n_layers * _LANE * _LANE * itemsize + n_layers * _LANE * 4
    blocks = 2 * 2 * rows * _LANE * 4      # double-buffered input + output blocks
    work = 4 * rows * _LANE * 4            # activation / temp working set
    need = 2 * (slabs + blocks + work)     # 2x headroom for compiler temporaries
    return int(min(max(need, 8 * 1024 * 1024), 64 * 1024 * 1024))


def generator_nn_forward_batched(xs, params, *, scaling_constant=1.0,
                                 activation="linear", matmul_dtype=jnp.bfloat16,
                                 instances_per_step=8):
    """xs: (G, batch, input_size) -- G independent forward instances in one pallas_call."""
    G, B, in_dim = xs.shape
    # TODO(synk): input_size > 128 would require K tiling of the first matmul.
    assert in_dim <= _LANE
    n_layers = len(params)
    n_hidden = n_layers - 1
    output_size = params[-1][0].shape[1]
    assert output_size <= _LANE

    gb = _choose_instance_block(G, B, instances_per_step)
    g_pad = -(-G // gb) * gb

    x = xs.astype(jnp.float32)
    if in_dim < _LANE:
        x = jnp.pad(x, ((0, 0), (0, 0), (0, _LANE - in_dim)))
    if g_pad > G:
        # Padded instances compute in isolation (per-instance norm) and are sliced off.
        x = jnp.pad(x, ((0, g_pad - G), (0, 0), (0, 0)))

    w_slab, b_slab = _pack_params(params, matmul_dtype)
    scale = jnp.full((1, 1), scaling_constant, jnp.float32)

    kernel = functools.partial(_generator_kernel, gb, B, n_hidden, activation, matmul_dtype)

    out = pl.pallas_call(
        kernel,
        out_shape=jax.ShapeDtypeStruct((g_pad, B, _LANE), jnp.float32),
        grid=(g_pad // gb,),
        in_specs=[
            # scaling_constant as a runtime SMEM scalar (changing it never recompiles).
            pl.BlockSpec((1, 1), lambda g: (0, 0),
                         memory_space=pltpu.MemorySpace.SMEM),
            pl.BlockSpec((gb, B, _LANE), lambda g: (g, 0, 0)),
            # Slabs: constant block index -> resident across grid steps (no re-DMA).
            pl.BlockSpec((n_layers, _LANE, _LANE), lambda g: (0, 0, 0)),
            pl.BlockSpec((n_layers, _LANE), lambda g: (0, 0)),
        ],
        # Lane-dense (gb, B, 128) output block -> unmasked stores; sliced in the wrapper.
        out_specs=pl.BlockSpec((gb, B, _LANE), lambda g: (g, 0, 0)),
        compiler_params=pltpu.CompilerParams(
            dimension_semantics=("parallel",),
            vmem_limit_bytes=_vmem_limit_bytes(n_layers, gb * B, matmul_dtype),
        ),
    )(scale, x, w_slab, b_slab)

    return out[:G, :, :output_size]


def generator_nn_forward(x, params, *, scaling_constant=1.0, activation="linear",
                         matmul_dtype=jnp.bfloat16):
    """Single-instance forward. x: (batch, input_size)."""
    return generator_nn_forward_batched(
        x[None], params, scaling_constant=scaling_constant,
        activation=activation, matmul_dtype=matmul_dtype)[0]


def init_params(key, input_size, hidden_layers, output_size):
    """Deterministic Linear-layer params (PyTorch-style init): W in (in, out), b in (1, out)."""
    dims = [input_size] + list(hidden_layers) + [output_size]
    params = []
    for i in range(len(dims) - 1):
        key, kw, kb = jax.random.split(key, 3)
        bound = 1.0 / jnp.sqrt(dims[i])
        w = jax.random.uniform(kw, (dims[i], dims[i + 1]), jnp.float32, -bound, bound)
        b = jax.random.uniform(kb, (1, dims[i + 1]), jnp.float32, -bound, bound)
        params.append((w, b))
    return params


def reference_forward(x, params, scaling_constant=1.0, activation="linear"):
    """Plain-JAX reference matching the PyTorch module semantics (full-precision matmuls)."""
    h = x
    for w, b in params[:-1]:
        h = jnp.dot(h, w, precision=jax.lax.Precision.HIGHEST) + b
        col_norm = jnp.sqrt(jnp.sum(h * h, axis=0, keepdims=True))
        h = h / jnp.maximum(col_norm, _COL_NORM_EPS)
        h = h * scaling_constant
        h = _apply_activation(h, activation)
    wf, bf = params[-1]
    return jnp.dot(h, wf, precision=jax.lax.Precision.HIGHEST) + bf


def _check_close(name, got, want, atol=2e-2, rtol=2e-2):
    diff = float(jnp.max(jnp.abs(got - want)))
    assert jnp.allclose(got, want, atol=atol, rtol=rtol), f"{name}: max|diff|={diff}"


if __name__ == "__main__":
    key = jax.random.PRNGKey(0)

    # Module defaults (already small): input_size=100, hidden=(50,25,12,6,3), out=1.
    input_size = 100
    hidden_layers = (50, 25, 12, 6, 3)
    output_size = 1
    scaling_constant = 1.0
    batch = 8

    key, kx = jax.random.split(key)
    x = jax.random.normal(kx, (batch, input_size), jnp.float32)
    params = init_params(key, input_size, hidden_layers, output_size)

    # 1) Single instance, f32 MXU operands: semantics check vs plain-JAX reference.
    out = jax.block_until_ready(
        generator_nn_forward(x, params, scaling_constant=scaling_constant,
                             matmul_dtype=jnp.float32))
    ref = reference_forward(x, params, scaling_constant)
    assert out.shape == (batch, output_size), out.shape
    _check_close("single-instance f32", out, ref)

    # 2) Many instances in one pallas_call with instance blocking (G=20 -> Gb=8, grid=3,
    #    padded instances sliced off), f32 operands.
    G = 20
    key, kxs = jax.random.split(key)
    xs = jax.random.normal(kxs, (G, batch, input_size), jnp.float32)
    outs = jax.block_until_ready(
        generator_nn_forward_batched(xs, params, scaling_constant=scaling_constant,
                                     matmul_dtype=jnp.float32))
    refs = jnp.stack([reference_forward(xs[g], params, scaling_constant)
                      for g in range(G)])
    assert outs.shape == (G, batch, output_size), outs.shape
    _check_close("blocked-instances f32", outs, refs)

    # 3) Non-default activation + scaling_constant (exercises EUP path), f32 operands.
    out_t = jax.block_until_ready(
        generator_nn_forward(x, params, scaling_constant=2.5, activation="tanh",
                             matmul_dtype=jnp.float32))
    ref_t = reference_forward(x, params, 2.5, "tanh")
    _check_close("tanh/scale=2.5 f32", out_t, ref_t)

    # 4) output_size > 1 coverage (lane-dense store, wrapper slice).
    params4 = init_params(jax.random.PRNGKey(1), input_size, hidden_layers, 4)
    out4 = jax.block_until_ready(
        generator_nn_forward(x, params4, scaling_constant=scaling_constant,
                             matmul_dtype=jnp.float32))
    ref4 = reference_forward(x, params4, scaling_constant)
    assert out4.shape == (batch, 4), out4.shape
    _check_close("output_size=4 f32", out4, ref4)

    # 5) Default bf16 MXU-operand fast path (v5e/v6e/v7x perf feed; f32 accumulation and
    #    f32 norm/activation math).  Operand rounding intentionally differs from f32, so
    #    only a sanity check here.
    outs_bf16 = jax.block_until_ready(
        generator_nn_forward_batched(xs, params, scaling_constant=scaling_constant))
    assert outs_bf16.shape == (G, batch, output_size), outs_bf16.shape
    assert bool(jnp.all(jnp.isfinite(outs_bf16)))

    print("KERNEL_OK")
</pallas_src>

<mosaic_0001>
module attributes {stable_mosaic.version = 11 : i64} {
  func.func @_generator_kernel(%arg0: i32, %arg1: memref<1x1xf32, #tpu.memory_space<smem>>, %arg2: memref<1x8x128xf32, #tpu.memory_space<vmem>>, %arg3: memref<6x128x128xf32, #tpu.memory_space<vmem>>, %arg4: memref<6x128xf32, #tpu.memory_space<vmem>>, %arg5: memref<1x8x128xf32, #tpu.memory_space<vmem>>) attributes {dimension_semantics = [#tpu.dimension_semantics<parallel>], iteration_bounds = array<i64: 1>, scalar_prefetch = 0 : i64, scratch_operands = 0 : i64, tpu.core_type = #tpu.core_type<tc>, window_params = [{transform_indices = @transform_0, window_bounds = array<i64: 1, 1>}, {transform_indices = @transform_1, window_bounds = array<i64: 1, 8, 128>}, {pipeline_mode = #tpu.pipeline_mode<synchronous>, transform_indices = @transform_2, window_bounds = array<i64: 6, 128, 128>}, {pipeline_mode = #tpu.pipeline_mode<synchronous>, transform_indices = @transform_3, window_bounds = array<i64: 6, 128>}, {transform_indices = @transform_4, window_bounds = array<i64: 1, 8, 128>}]} {
    %c0 = arith.constant 0 : index
    %c0_0 = arith.constant 0 : index
    %0 = memref.load %arg1[%c0, %c0_0] : memref<1x1xf32, #tpu.memory_space<smem>>
    %c0_1 = arith.constant 0 : index
    %c0_2 = arith.constant 0 : index
    %c0_3 = arith.constant 0 : index
    %1 = vector.load %arg2[%c0_1, %c0_2, %c0_3] : memref<1x8x128xf32, #tpu.memory_space<vmem>>, vector<1x8x128xf32>
    %2 = vector.shape_cast %1 : vector<1x8x128xf32> to vector<8x128xf32>
    %c0_4 = arith.constant 0 : index
    %c0_5 = arith.constant 0 : index
    %c0_6 = arith.constant 0 : index
    %3 = vector.load %arg3[%c0_4, %c0_5, %c0_6] : memref<6x128x128xf32, #tpu.memory_space<vmem>>, vector<1x128x128xf32>
    %4 = vector.shape_cast %3 : vector<1x128x128xf32> to vector<128x128xf32>
    %cst = arith.constant dense<0.000000e+00> : vector<8x128xf32>
    %5 = tpu.matmul %2, %4, %cst {dimension_numbers = #tpu.dot_dimension_numbers<[1], [0], [0], [1], [0, 0, 1, 1], [], []>} : vector<8x128xf32>, vector<128x128xf32>, vector<8x128xf32> -> vector<8x128xf32>
    %c0_7 = arith.constant 0 : index
    %c0_8 = arith.constant 0 : index
    %6 = vector.load %arg4[%c0_7, %c0_8] : memref<6x128xf32, #tpu.memory_space<vmem>>, vector<1x128xf32>
    %7 = vector.broadcast %6 : vector<1x128xf32> to vector<8x128xf32>
    %8 = arith.addf %5, %7 : vector<8x128xf32>
    %9 = arith.mulf %8, %8 : vector<8x128xf32>
    %cst_9 = arith.constant dense<0.000000e+00> : vector<128xf32>
    %10 = vector.multi_reduction <add>, %9, %cst_9 [0] : vector<8x128xf32> to vector<128xf32>
    %11 = vector.shape_cast %10 : vector<128xf32> to vector<1x128xf32>
    %12 = math.sqrt %11 : vector<1x128xf32>
    %cst_10 = arith.constant 9.99999996E-13 : f32
    %13 = vector.broadcast %cst_10 : f32 to vector<1x128xf32>
    %14 = arith.maximumf %12, %13 : vector<1x128xf32>
    %15 = vector.broadcast %0 : f32 to vector<1x128xf32>
    %16 = arith.divf %15, %14 : vector<1x128xf32>
    %17 = vector.broadcast %16 : vector<1x128xf32> to vector<8x128xf32>
    %18 = arith.mulf %8, %17 : vector<8x128xf32>
    %c1 = arith.constant 1 : index
    %c0_11 = arith.constant 0 : index
    %c0_12 = arith.constant 0 : index
    %19 = vector.load %arg3[%c1, %c0_11, %c0_12] : memref<6x128x128xf32, #tpu.memory_space<vmem>>, vector<1x128x128xf32>
    %20 = vector.shape_cast %19 : vector<1x128x128xf32> to vector<128x128xf32>
    %cst_13 = arith.constant dense<0.000000e+00> : vector<8x128xf32>
    %21 = tpu.matmul %18, %20, %cst_13 {dimension_numbers = #tpu.dot_dimension_numbers<[1], [0], [0], [1], [0, 0, 1, 1], [], []>} : vector<8x128xf32>, vector<128x128xf32>, vector<8x128xf32> -> vector<8x128xf32>
    %c1_14 = arith.constant 1 : index
    %c0_15 = arith.constant 0 : index
    %22 = vector.load %arg4[%c1_14, %c0_15] : memref<6x128xf32, #tpu.memory_space<vmem>>, vector<1x128xf32>
    %23 = vector.broadcast %22 : vector<1x128xf32> to vector<8x128xf32>
    %24 = arith.addf %21, %23 : vector<8x128xf32>
    %25 = arith.mulf %24, %24 : vector<8x128xf32>
    %cst_16 = arith.constant dense<0.000000e+00> : vector<128xf32>
    %26 = vector.multi_reduction <add>, %25, %cst_16 [0] : vector<8x128xf32> to vector<128xf32>
    %27 = vector.shape_cast %26 : vector<128xf32> to vector<1x128xf32>
    %28 = math.sqrt %27 : vector<1x128xf32>
    %cst_17 = arith.constant 9.99999996E-13 : f32
    %29 = vector.broadcast %cst_17 : f32 to vector<1x128xf32>
    %30 = arith.maximumf %28, %29 : vector<1x128xf32>
    %31 = vector.broadcast %0 : f32 to vector<1x128xf32>
    %32 = arith.divf %31, %30 : vector<1x128xf32>
    %33 = vector.broadcast %32 : vector<1x128xf32> to vector<8x128xf32>
    %34 = arith.mulf %24, %33 : vector<8x128xf32>
    %c2 = arith.constant 2 : index
    %c0_18 = arith.constant 0 : index
    %c0_19 = arith.constant 0 : index
    %35 = vector.load %arg3[%c2, %c0_18, %c0_19] : memref<6x128x128xf32, #tpu.memory_space<vmem>>, vector<1x128x128xf32>
    %36 = vector.shape_cast %35 : vector<1x128x128xf32> to vector<128x128xf32>
    %cst_20 = arith.constant dense<0.000000e+00> : vector<8x128xf32>
    %37 = tpu.matmul %34, %36, %cst_20 {dimension_numbers = #tpu.dot_dimension_numbers<[1], [0], [0], [1], [0, 0, 1, 1], [], []>} : vector<8x128xf32>, vector<128x128xf32>, vector<8x128xf32> -> vector<8x128xf32>
    %c2_21 = arith.constant 2 : index
    %c0_22 = arith.constant 0 : index
    %38 = vector.load %arg4[%c2_21, %c0_22] : memref<6x128xf32, #tpu.memory_space<vmem>>, vector<1x128xf32>
    %39 = vector.broadcast %38 : vector<1x128xf32> to vector<8x128xf32>
    %40 = arith.addf %37, %39 : vector<8x128xf32>
    %41 = arith.mulf %40, %40 : vector<8x128xf32>
    %cst_23 = arith.constant dense<0.000000e+00> : vector<128xf32>
    %42 = vector.multi_reduction <add>, %41, %cst_23 [0] : vector<8x128xf32> to vector<128xf32>
    %43 = vector.shape_cast %42 : vector<128xf32> to vector<1x128xf32>
    %44 = math.sqrt %43 : vector<1x128xf32>
    %cst_24 = arith.constant 9.99999996E-13 : f32
    %45 = vector.broadcast %cst_24 : f32 to vector<1x128xf32>
    %46 = arith.maximumf %44, %45 : vector<1x128xf32>
    %47 = vector.broadcast %0 : f32 to vector<1x128xf32>
    %48 = arith.divf %47, %46 : vector<1x128xf32>
    %49 = vector.broadcast %48 : vector<1x128xf32> to vector<8x128xf32>
    %50 = arith.mulf %40, %49 : vector<8x128xf32>
    %c3 = arith.constant 3 : index
    %c0_25 = arith.constant 0 : index
    %c0_26 = arith.constant 0 : index
    %51 = vector.load %arg3[%c3, %c0_25, %c0_26] : memref<6x128x128xf32, #tpu.memory_space<vmem>>, vector<1x128x128xf32>
    %52 = vector.shape_cast %51 : vector<1x128x128xf32> to vector<128x128xf32>
    %cst_27 = arith.constant dense<0.000000e+00> : vector<8x128xf32>
    %53 = tpu.matmul %50, %52, %cst_27 {dimension_numbers = #tpu.dot_dimension_numbers<[1], [0], [0], [1], [0, 0, 1, 1], [], []>} : vector<8x128xf32>, vector<128x128xf32>, vector<8x128xf32> -> vector<8x128xf32>
    %c3_28 = arith.constant 3 : index
    %c0_29 = arith.constant 0 : index
    %54 = vector.load %arg4[%c3_28, %c0_29] : memref<6x128xf32, #tpu.memory_space<vmem>>, vector<1x128xf32>
    %55 = vector.broadcast %54 : vector<1x128xf32> to vector<8x128xf32>
    %56 = arith.addf %53, %55 : vector<8x128xf32>
    %57 = arith.mulf %56, %56 : vector<8x128xf32>
    %cst_30 = arith.constant dense<0.000000e+00> : vector<128xf32>
    %58 = vector.multi_reduction <add>, %57, %cst_30 [0] : vector<8x128xf32> to vector<128xf32>
    %59 = vector.shape_cast %58 : vector<128xf32> to vector<1x128xf32>
    %60 = math.sqrt %59 : vector<1x128xf32>
    %cst_31 = arith.constant 9.99999996E-13 : f32
    %61 = vector.broadcast %cst_31 : f32 to vector<1x128xf32>
    %62 = arith.maximumf %60, %61 : vector<1x128xf32>
    %63 = vector.broadcast %0 : f32 to vector<1x128xf32>
    %64 = arith.divf %63, %62 : vector<1x128xf32>
    %65 = vector.broadcast %64 : vector<1x128xf32> to vector<8x128xf32>
    %66 = arith.mulf %56, %65 : vector<8x128xf32>
    %c4 = arith.constant 4 : index
    %c0_32 = arith.constant 0 : index
    %c0_33 = arith.constant 0 : index
    %67 = vector.load %arg3[%c4, %c0_32, %c0_33] : memref<6x128x128xf32, #tpu.memory_space<vmem>>, vector<1x128x128xf32>
    %68 = vector.shape_cast %67 : vector<1x128x128xf32> to vector<128x128xf32>
    %cst_34 = arith.constant dense<0.000000e+00> : vector<8x128xf32>
    %69 = tpu.matmul %66, %68, %cst_34 {dimension_numbers = #tpu.dot_dimension_numbers<[1], [0], [0], [1], [0, 0, 1, 1], [], []>} : vector<8x128xf32>, vector<128x128xf32>, vector<8x128xf32> -> vector<8x128xf32>
    %c4_35 = arith.constant 4 : index
    %c0_36 = arith.constant 0 : index
    %70 = vector.load %arg4[%c4_35, %c0_36] : memref<6x128xf32, #tpu.memory_space<vmem>>, vector<1x128xf32>
    %71 = vector.broadcast %70 : vector<1x128xf32> to vector<8x128xf32>
    %72 = arith.addf %69, %71 : vector<8x128xf32>
    %73 = arith.mulf %72, %72 : vector<8x128xf32>
    %cst_37 = arith.constant dense<0.000000e+00> : vector<128xf32>
    %74 = vector.multi_reduction <add>, %73, %cst_37 [0] : vector<8x128xf32> to vector<128xf32>
    %75 = vector.shape_cast %74 : vector<128xf32> to vector<1x128xf32>
    %76 = math.sqrt %75 : vector<1x128xf32>
    %cst_38 = arith.constant 9.99999996E-13 : f32
    %77 = vector.broadcast %cst_38 : f32 to vector<1x128xf32>
    %78 = arith.maximumf %76, %77 : vector<1x128xf32>
    %79 = vector.broadcast %0 : f32 to vector<1x128xf32>
    %80 = arith.divf %79, %78 : vector<1x128xf32>
    %81 = vector.broadcast %80 : vector<1x128xf32> to vector<8x128xf32>
    %82 = arith.mulf %72, %81 : vector<8x128xf32>
    %c5 = arith.constant 5 : index
    %c0_39 = arith.constant 0 : index
    %c0_40 = arith.constant 0 : index
    %83 = vector.load %arg3[%c5, %c0_39, %c0_40] : memref<6x128x128xf32, #tpu.memory_space<vmem>>, vector<1x128x128xf32>
    %84 = vector.shape_cast %83 : vector<1x128x128xf32> to vector<128x128xf32>
    %cst_41 = arith.constant dense<0.000000e+00> : vector<8x128xf32>
    %85 = tpu.matmul %82, %84, %cst_41 {dimension_numbers = #tpu.dot_dimension_numbers<[1], [0], [0], [1], [0, 0, 1, 1], [], []>} : vector<8x128xf32>, vector<128x128xf32>, vector<8x128xf32> -> vector<8x128xf32>
    %c5_42 = arith.constant 5 : index
    %c0_43 = arith.constant 0 : index
    %86 = vector.load %arg4[%c5_42, %c0_43] : memref<6x128xf32, #tpu.memory_space<vmem>>, vector<1x128xf32>
    %87 = vector.broadcast %86 : vector<1x128xf32> to vector<8x128xf32>
    %88 = arith.addf %85, %87 : vector<8x128xf32>
    %c0_44 = arith.constant 0 : index
    %c0_45 = arith.constant 0 : index
    %c0_46 = arith.constant 0 : index
    %89 = vector.load %arg5[%c0_44, %c0_45, %c0_46] : memref<1x8x128xf32, #tpu.memory_space<vmem>>, vector<1x8x128xf32>
    %90 = vector.shape_cast %89 : vector<1x8x128xf32> to vector<8x128xf32>
    %91 = vector.shape_cast %88 : vector<8x128xf32> to vector<1x8x128xf32>
    tpu.vector_store %arg5[%c0_44, %c0_45, %c0_46], %91 {strides = array<i32>} : memref<1x8x128xf32, #tpu.memory_space<vmem>>, vector<1x8x128xf32>,
    return
  }
  func.func @transform_0(%arg0: i32) -> (i32, i32) {
    %c0_i32 = arith.constant 0 : i32
    %c0_i32_0 = arith.constant 0 : i32
    %c0_i32_1 = arith.constant 0 : i32
    return %c0_i32, %c0_i32_0 : i32, i32
  }
  func.func @transform_1(%arg0: i32) -> (i32, i32, i32) {
    %c0_i32 = arith.constant 0 : i32
    %c0_i32_0 = arith.constant 0 : i32
    %c0_i32_1 = arith.constant 0 : i32
    return %arg0, %c0_i32, %c0_i32_0 : i32, i32, i32
  }
  func.func @transform_2(%arg0: i32) -> (i32, i32, i32) {
    %c0_i32 = arith.constant 0 : i32
    %c0_i32_0 = arith.constant 0 : i32
    %c0_i32_1 = arith.constant 0 : i32
    %c0_i32_2 = arith.constant 0 : i32
    return %c0_i32, %c0_i32_0, %c0_i32_1 : i32, i32, i32
  }
  func.func @transform_3(%arg0: i32) -> (i32, i32) {
    %c0_i32 = arith.constant 0 : i32
    %c0_i32_0 = arith.constant 0 : i32
    %c0_i32_1 = arith.constant 0 : i32
    return %c0_i32, %c0_i32_0 : i32, i32
  }
  func.func @transform_4(%arg0: i32) -> (i32, i32, i32) {
    %c0_i32 = arith.constant 0 : i32
    %c0_i32_0 = arith.constant 0 : i32
    %c0_i32_1 = arith.constant 0 : i32
    return %arg0, %c0_i32, %c0_i32_0 : i32, i32, i32
  }
}

</mosaic_0001>

<bundles_post_ra>
// kernel: tpu_custom_call.1
= control target key start
LH: loop header
LB: loop body
LE: loop exit
PB: predicated region body
PF: predicated region fallthrough
CT: control target
= control target key end

     0   :  { %10 = vsyncpa [#allocation4], 0  ;;  %s694_s0 = inlined_call_operand.<no memory space> [shape: f32[1,1], index: 0, kind: input, shape index: {}]   ;;  %s695_s1 = inlined_call_operand.hbm [shape: f32[1,8,128], index: 1, kind: input, shape index: {}]   ;;  %s696_s2 = inlined_call_operand.hbm [shape: f32[6,128,128], index: 2, kind: input, shape index: {}]   ;;  %s697_s3 = inlined_call_operand.hbm [shape: f32[6,128], index: 3, kind: input, shape index: {}]   ;;  %s698_s4 = inlined_call_operand.hbm [shape: f32[1,8,128], index: 4, kind: output, shape index: {}]  }
   0x1   :  { %11 = vsyncpa [#allocation7], 0  ;;  %s30_s17 = sshll.u32 %s696_s2, 4  ;;  %s31_s17 = int_to_ptr.hbm [resolvable:$true] %s30_s17 }
   0x2   :  { %12 = vsyncpa [#allocation5], 0  ;;  %s631_s18 = smov [#allocation6]   ;;  %s20_s22 = sshll.u32 %s695_s1, 4  ;;  %s21_s22 = int_to_ptr.hbm [resolvable:$true] %s20_s22 }
   0x3   :  { %s32_s19 = sshll.u32 %s631_s18, 4  ;;  %s632_s23 = smov 128   ;;  %s33_s19 = int_to_ptr.vmem [resolvable:$true] %s32_s19 }
   0x4   :  { %s633_s24 = smov 8   ;;  %s634_s25 = smov [#allocation3]  }
   0x5   :  { %38 = dma.hbm_to_vmem [thread:$0]  %s31_s17, 12288, %s33_s19, [#allocation7], %s632_s23, %s632_s23, %s633_s24  }
   0x6   :  { %s22_s26 = sshll.u32 %s634_s25, 4  ;;  %s44_s29 = sshll.u32 %s697_s3, 4  ;;  %s23_s26 = int_to_ptr.vmem [resolvable:$true] %s22_s26  ;;  %s45_s29 = int_to_ptr.hbm [resolvable:$true] %s44_s29 }
   0x7   :  { %25 = dma.hbm_to_vmem [thread:$0]  %s21_s22, 128, %s23_s26, [#allocation4]  }
   0x8   :  { %s635_s2 = smov [#allocation8]  }
   0x9   :  { %s46_s30 = sshll.u32 %s635_s2, 4  ;;  %s47_s30 = int_to_ptr.vmem [resolvable:$true] %s46_s30 }
   0xa   :  { %49 = dma.hbm_to_vmem [thread:$0]  %s45_s29, 128, %s47_s30, [#allocation7]  }
   0xb   :  { %625 = dma.done.wait [#allocation4], 128  }
   0xc   :  { %626 = vsyncadd [#allocation4], 4294967168 }
   0xd   :  { %627 = dma.done.wait [#allocation7], 12416  }
   0xe   :  { %628 = vsyncadd [#allocation7], 4294954880  ;;  %v79_v0 = vld [vmem:[#allocation6 + $0x78] sm:$0xff]  ;;  %v78_v1 = vld [vmem:[#allocation6 + $0x70] sm:$0xff]  ;;  %v674_v61 = vstv %s694_s0  ;;  %s636_s0 = smov [#allocation9]   ;;  %s486_s8 = sshll.u32 %s698_s4, 4  ;;  %s487_s8 = int_to_ptr.hbm [resolvable:$true] %s486_s8 }
   0xf   :  { %82 = vmatpush.msra.mxu0 %v79_v0  ;;  %v77_v2 = vld [vmem:[#allocation6 + $0x68] sm:$0xff]  ;;  %v76_v3 = vld [vmem:[#allocation6 + $0x60] sm:$0xff]  ;;  %v75_v4 = vld [vmem:[#allocation6 + $0x58] sm:$0xff]  ;;  %s484_s5 = sshll.u32 %s636_s0, 4  ;;  %s485_s5 = int_to_ptr.vmem [resolvable:$true] %s484_s5 }
  0x10   :  { %v74_v5 = vld [vmem:[#allocation6 + $0x50] sm:$0xff]  ;;  %v73_v6 = vld [vmem:[#allocation6 + $0x48] sm:$0xff]  ;;  %v72_v7 = vld [vmem:[#allocation6 + $0x40] sm:$0xff] }
  0x11   :  { %83 = vmatpush.msra.mxu0 %v78_v1  ;;  %v71_v8 = vld [vmem:[#allocation6 + $0x38] sm:$0xff]  ;;  %v70_v9 = vld [vmem:[#allocation6 + $0x30] sm:$0xff]  ;;  %v69_v10 = vld [vmem:[#allocation6 + $0x28] sm:$0xff] }
  0x12   :  { %v68_v11 = vld [vmem:[#allocation6 + $0x20] sm:$0xff]  ;;  %v67_v12 = vld [vmem:[#allocation6 + $0x18] sm:$0xff]  ;;  %v66_v13 = vld [vmem:[#allocation6 + $0x10] sm:$0xff] }
  0x13   :  { %84 = vmatpush.msra.mxu0 %v77_v2  ;;  %v65_v14 = vld [vmem:[#allocation6 + $0x8] sm:$0xff]  ;;  %v64_v15 = vld [vmem:[#allocation6] sm:$0xff]  ;;  %v63_v16 = vld [vmem:[#allocation3] sm:$0xff] }
  0x14   :  { %v155_v17 = vld [vmem:[#allocation6 + $0xf8] sm:$0xff]  ;;  %v154_v18 = vld [vmem:[#allocation6 + $0xf0] sm:$0xff]  ;;  %v153_v19 = vld [vmem:[#allocation6 + $0xe8] sm:$0xff] }
  0x15   :  { %85 = vmatpush.msra.mxu0 %v76_v3  ;;  %158 = vmatpush.msra.mxu1 %v155_v17  ;;  %v152_v20 = vld [vmem:[#allocation6 + $0xe0] sm:$0xff]  ;;  %v151_v22 = vld [vmem:[#allocation6 + $0xd8] sm:$0xff]  ;;  %v150_v24 = vld [vmem:[#allocation6 + $0xd0] sm:$0xff] }
  0x16   :  { %v503_v21 = vld [vmem:[#allocation8] ss:$0 sm:$0xff]  ;;  %v149_v26 = vld [vmem:[#allocation6 + $0xc8] sm:$0xff]  ;;  %v147_v30 = vld [vmem:[#allocation6 + $0xb8] sm:$0xff] }
  0x17   :  { %86 = vmatpush.msra.mxu0 %v75_v4  ;;  %159 = vmatpush.msra.mxu1 %v154_v18  ;;  %v148_v28 = vld [vmem:[#allocation6 + $0xc0] sm:$0xff]  ;;  %v146_v32 = vld [vmem:[#allocation6 + $0xb0] sm:$0xff]  ;;  %v145_v34 = vld [vmem:[#allocation6 + $0xa8] sm:$0xff] }
  0x18   :  { %v144_v36 = vld [vmem:[#allocation6 + $0xa0] sm:$0xff]  ;;  %v143_v38 = vld [vmem:[#allocation6 + $0x98] sm:$0xff]  ;;  %v142_v40 = vld [vmem:[#allocation6 + $0x90] sm:$0xff] }
  0x19   :  { %87 = vmatpush.msra.mxu0 %v74_v5  ;;  %160 = vmatpush.msra.mxu1 %v153_v19  ;;  %v141_v41 = vld [vmem:[#allocation6 + $0x88] sm:$0xff]  ;;  %v140_v42 = vld [vmem:[#allocation6 + $0x80] sm:$0xff]  ;;  %v230_v3 = vld [vmem:[#allocation6 + $0x178] sm:$0xff] }
  0x1a   :  { %v229_v4 = vld [vmem:[#allocation6 + $0x170] sm:$0xff]  ;;  %233 = vmatpush.msra.mxu2 %v230_v3  ;;  %v228_v5 = vld [vmem:[#allocation6 + $0x168] sm:$0xff] }
  0x1b   :  { %88 = vmatpush.msra.mxu0 %v73_v6  ;;  %161 = vmatpush.msra.mxu1 %v152_v20  ;;  %v227_v6 = vld [vmem:[#allocation6 + $0x160] sm:$0xff]  ;;  %v221_v18 = vld [vmem:[#allocation6 + $0x130] sm:$0xff]  ;;  %v220_v20 = vld [vmem:[#allocation6 + $0x128] sm:$0xff] }
  0x1c   :  { %234 = vmatpush.msra.mxu2 %v229_v4  ;;  %v296_v4 = vld [vmem:[#allocation6 + $0x1b0] sm:$0xff] }
  0x1d   :  { %89 = vmatpush.msra.mxu0 %v72_v7  ;;  %162 = vmatpush.msra.mxu1 %v151_v22  ;;  %v504_v7 = vld [vmem:[#allocation8 + $0x1] ss:$0 sm:$0xff] }
  0x1e   :  { %235 = vmatpush.msra.mxu2 %v228_v5  ;;  %v219_v22 = vld [vmem:[#allocation6 + $0x120] sm:$0xff] }
  0x1f   :  { %90 = vmatpush.msra.mxu0 %v71_v8  ;;  %163 = vmatpush.msra.mxu1 %v150_v24  ;;  %v226_v8 = vld [vmem:[#allocation6 + $0x158] sm:$0xff] }
  0x20   :  { %236 = vmatpush.msra.mxu2 %v227_v6  ;;  %v218_v24 = vld [vmem:[#allocation6 + $0x118] sm:$0xff]  ;;  %v295_v6 = vld [vmem:[#allocation6 + $0x1a8] sm:$0xff] }
  0x21   :  { %91 = vmatpush.msra.mxu0 %v70_v9  ;;  %164 = vmatpush.msra.mxu1 %v149_v26  ;;  %v217_v26 = vld [vmem:[#allocation6 + $0x110] sm:$0xff] }
  0x22   :  { %237 = vmatpush.msra.mxu2 %v226_v8  ;;  %v294_v8 = vld [vmem:[#allocation6 + $0x1a0] sm:$0xff] }
  0x23   :  { %92 = vmatpush.msra.mxu0 %v69_v10  ;;  %165 = vmatpush.msra.mxu1 %v148_v28  ;;  %v225_v10 = vld [vmem:[#allocation6 + $0x150] sm:$0xff]  ;;  %v215_v28 = vld [vmem:[#allocation6 + $0x100] sm:$0xff] }
  0x24   :  { %238 = vmatpush.msra.mxu2 %v225_v10  ;;  %v293_v10 = vld [vmem:[#allocation6 + $0x198] sm:$0xff] }
  0x25   :  { %93 = vmatpush.msra.mxu0 %v68_v11  ;;  %166 = vmatpush.msra.mxu1 %v147_v30 }
  0x27   :  { %94 = vmatpush.msra.mxu0 %v67_v12  ;;  %167 = vmatpush.msra.mxu1 %v146_v32  ;;  %v224_v12 = vld [vmem:[#allocation6 + $0x148] sm:$0xff] }
  0x28   :  { %239 = vmatpush.msra.mxu2 %v224_v12  ;;  %v292_v12 = vld [vmem:[#allocation6 + $0x190] sm:$0xff] }
  0x29   :  { %95 = vmatpush.msra.mxu0 %v66_v13  ;;  %168 = vmatpush.msra.mxu1 %v145_v34 }
  0x2b   :  { %96 = vmatpush.msra.mxu0 %v65_v14  ;;  %169 = vmatpush.msra.mxu1 %v144_v36  ;;  %v223_v14 = vld [vmem:[#allocation6 + $0x140] sm:$0xff] }
  0x2c   :  { %240 = vmatpush.msra.mxu2 %v223_v14  ;;  %v290_v14 = vld [vmem:[#allocation6 + $0x180] sm:$0xff] }
  0x2d   :  { %97 = vmatpush.msra.mxu0 %v64_v15  ;;  %170 = vmatpush.msra.mxu1 %v143_v38 }
  0x2e   :  { %98 = vmatmul.f32.vlgmr.msra.gmra.mxu0 %v63_v16  ;;  %v222_v16 = vld [vmem:[#allocation6 + $0x138] sm:$0xff] }
  0x2f   :  { %171 = vmatpush.msra.mxu1 %v142_v40  ;;  %241 = vmatpush.msra.mxu2 %v222_v16 }
  0x31   :  { %172 = vmatpush.msra.mxu1 %v141_v41  ;;  %242 = vmatpush.msra.mxu2 %v221_v18 }
  0x33   :  { %173 = vmatpush.msra.mxu1 %v140_v42  ;;  %243 = vmatpush.msra.mxu2 %v220_v20 }
  0x35   :  { %244 = vmatpush.msra.mxu2 %v219_v22 }
  0x37   :  { %245 = vmatpush.msra.mxu2 %v218_v24 }
  0x39   :  { %246 = vmatpush.msra.mxu2 %v217_v26 }
  0xab   :  { %v99_v23 = vpop.f32.mrf.mxu0 }
  0xac   :  { %v100_v25 = vadd.f32 %v503_v21, %v99_v23 }
  0xae   :  { %v102_v27 = vmul.f32 %v100_v25, %v100_v25 }
  0xb0   :  { %v103_v29 = vrot.slane %v102_v27, 4 }
  0xb2   :  { %v104_v31 = vadd.f32 %v103_v29, %v102_v27  ;;  %v216_v27 = vld [vmem:[#allocation6 + $0x108] sm:$0xff] }
  0xb3   :  { %247 = vmatpush.msra.mxu2 %v216_v27 }
  0xb4   :  { %v105_v33 = vrot.slane %v104_v31, 2 }
  0xb5   :  { %248 = vmatpush.msra.mxu2 %v215_v28 }
  0xb6   :  { %v106_v35 = vadd.f32 %v105_v33, %v104_v31 }
  0xb8   :  { %v107_v37 = vrot.slane %v106_v35, 1 }
  0xba   :  { %v108_v39 = vadd.f32 %v107_v37, %v106_v35 }
  0xbc   :  { %509 = vrsqrt.f32 %v108_v39  ;;  %vm116_vm0 = vcmp.eq.f32.partialorder %v108_v39, inf  ;;  %v119_v50 = vand.u32 2147483648, %v108_v39  ;;  %vm118_vm1 = vcmp.eq.f32.partialorder %v108_v39, 0.0 }
  0xc2   :  { %v510_v43 = vpop.eup %509 }
  0xc3   :  { %v110_v44 = vmul.f32 %v510_v43, %v108_v39 }
  0xc5   :  { %v111_v45 = vmul.f32 %v510_v43, %v110_v44 }
  0xc7   :  { %v112_v46 = vmul.f32 0.5, %v111_v45 }
  0xc9   :  { %v113_v47 = vsub.f32 1.5, %v112_v46 }
  0xcb   :  { %v114_v48 = vmul.f32 %v510_v43, %v113_v47 }
  0xcd   :  { %v115_v49 = vmul.f32 %v114_v48, %v108_v39 }
  0xcf   :  { %v117_v51 = vsel %vm116_vm0, %v108_v39, %v115_v49 }
  0xd0   :  { %v120_v52 = vsel %vm118_vm1, %v119_v50, %v117_v51 }
  0xd1   :  { %v121_v53 = vmax.f32 %v120_v52, 1e-12  ;;  %v305_v52 = vld [vmem:[#allocation6 + $0x1f8] sm:$0xff] }
  0xd2   :  { %308 = vmatpush.msra.mxu3 %v305_v52 }
  0xd3   :  { %511 = vrcp.f32 %v121_v53  ;;  %v134_v57 = vand.u32 2147483648, %v121_v53  ;;  %v132_v59 = vand.u32 2147483647, %v121_v53  ;;  %vm128_vm3 = vweird.f32 %v121_v53 }
  0xd5   :  { %v135_v62 = vor.u32 1.1754944e-38, %v134_v57  ;;  %vm133_vm5 = vcmp.eq.f32.partialorder %v132_v59, 8.507059e+37  ;;  %v301_v57 = vld [vmem:[#allocation6 + $0x1d8] sm:$0xff]  ;;  %v300_v59 = vld [vmem:[#allocation6 + $0x1d0] sm:$0xff] }
  0xd9   :  { %v512_v54 = vpop.eup %511 }
  0xda   :  { %v124_v55 = vmul.f32 %v512_v54, %v121_v53  ;;  %vm129_vm2 = vweird.f32 %v512_v54  ;;  %v304_v53 = vld [vmem:[#allocation6 + $0x1f0] sm:$0xff] }
  0xdb   :  { %vm130_vm4 = vmor %vm128_vm3, %vm129_vm2  ;;  %309 = vmatpush.msra.mxu3 %v304_v53  ;;  %v373_v53 = vld [vmem:[#allocation6 + $0x240] sm:$0xff] }
  0xdc   :  { %v125_v56 = vsub.f32 1.0, %v124_v55  ;;  %v302_v55 = vld [vmem:[#allocation6 + $0x1e0] sm:$0xff] }
  0xde   :  { %v126_v58 = vmul.f32 %v512_v54, %v125_v56  ;;  %v505_v56 = vld [vmem:[#allocation8 + $0x2] ss:$0 sm:$0xff] }
  0xe0   :  { %v127_v60 = vadd.f32 %v512_v54, %v126_v58 }
  0xe2   :  { %v131_v63 = vsel %vm130_vm4, %v512_v54, %v127_v60  ;;  %v303_v54 = vld [vmem:[#allocation6 + $0x1e8] sm:$0xff] }
  0xe3   :  { %v136_v0 = vsel %vm133_vm5, %v135_v62, %v131_v63  ;;  %310 = vmatpush.msra.mxu3 %v303_v54  ;;  %v299_v62 = vld [vmem:[#allocation6 + $0x1c8] sm:$0xff] }
  0xe4   :  { %v137_v1 = vmul.f32 %v136_v0, %v674_v61  ;;  %v298_v0 = vld [vmem:[#allocation6 + $0x1c0] sm:$0xff] }
  0xe5   :  { %311 = vmatpush.msra.mxu3 %v302_v55  ;;  %v372_v55 = vld [vmem:[#allocation6 + $0x238] sm:$0xff] }
  0xe6   :  { %v138_v2 = vmul.f32 %v137_v1, %v100_v25 }
  0xe7   :  { %312 = vmatpush.msra.mxu3 %v301_v57  ;;  %v371_v57 = vld [vmem:[#allocation6 + $0x230] sm:$0xff] }
  0xe8   :  { %174 = vmatmul.f32.vlgmr.msra.gmra.mxu1 %v138_v2  ;;  %v297_v2 = vld [vmem:[#allocation6 + $0x1b8] sm:$0xff] }
  0xe9   :  { %313 = vmatpush.msra.mxu3 %v300_v59  ;;  %v369_v59 = vld [vmem:[#allocation6 + $0x220] sm:$0xff] }
  0xeb   :  { %314 = vmatpush.msra.mxu3 %v299_v62 }
  0xed   :  { %315 = vmatpush.msra.mxu3 %v298_v0 }
  0xef   :  { %316 = vmatpush.msra.mxu3 %v297_v2 }
  0xf1   :  { %317 = vmatpush.msra.mxu3 %v296_v4 }
  0xf3   :  { %318 = vmatpush.msra.mxu3 %v295_v6 }
  0xf5   :  { %319 = vmatpush.msra.mxu3 %v294_v8 }
  0xf7   :  { %320 = vmatpush.msra.mxu3 %v293_v10 }
  0xf9   :  { %321 = vmatpush.msra.mxu3 %v292_v12 }
 0x165   :  { %v175_v9 = vpop.f32.mrf.mxu1 }
 0x166   :  { %v176_v11 = vadd.f32 %v504_v7, %v175_v9 }
 0x168   :  { %v178_v13 = vmul.f32 %v176_v11, %v176_v11 }
 0x16a   :  { %v179_v15 = vrot.slane %v178_v13, 4 }
 0x16c   :  { %v180_v17 = vadd.f32 %v179_v15, %v178_v13  ;;  %v291_v13 = vld [vmem:[#allocation6 + $0x188] sm:$0xff] }
 0x16d   :  { %322 = vmatpush.msra.mxu3 %v291_v13 }
 0x16e   :  { %v181_v19 = vrot.slane %v180_v17, 2 }
 0x16f   :  { %323 = vmatpush.msra.mxu3 %v290_v14 }
 0x170   :  { %v182_v21 = vadd.f32 %v181_v19, %v180_v17 }
 0x172   :  { %v183_v23 = vrot.slane %v182_v21, 1 }
 0x174   :  { %v184_v25 = vadd.f32 %v183_v23, %v182_v21 }
 0x176   :  { %513 = vrsqrt.f32 %v184_v25  ;;  %vm192_vm6 = vcmp.eq.f32.partialorder %v184_v25, inf  ;;  %v195_v36 = vand.u32 2147483648, %v184_v25  ;;  %vm194_vm7 = vcmp.eq.f32.partialorder %v184_v25, 0.0 }
 0x17c   :  { %v514_v29 = vpop.eup %513 }
 0x17d   :  { %v186_v30 = vmul.f32 %v514_v29, %v184_v25 }
 0x17f   :  { %v187_v31 = vmul.f32 %v514_v29, %v186_v30 }
 0x181   :  { %v188_v32 = vmul.f32 0.5, %v187_v31 }
 0x183   :  { %v189_v33 = vsub.f32 1.5, %v188_v32 }
 0x185   :  { %v190_v34 = vmul.f32 %v514_v29, %v189_v33 }
 0x187   :  { %v191_v35 = vmul.f32 %v190_v34, %v184_v25 }
 0x189   :  { %v193_v37 = vsel %vm192_vm6, %v184_v25, %v191_v35 }
 0x18a   :  { %v196_v38 = vsel %vm194_vm7, %v195_v36, %v193_v37 }
 0x18b   :  { %v197_v39 = vmax.f32 %v196_v38, 1e-12  ;;  %v506_v38 = vld [vmem:[#allocation8 + $0x3] ss:$0 sm:$0xff] }
 0x18d   :  { %515 = vrcp.f32 %v197_v39  ;;  %v209_v43 = vand.u32 2147483648, %v197_v39  ;;  %v207_v45 = vand.u32 2147483647, %v197_v39  ;;  %vm203_vm9 = vweird.f32 %v197_v39 }
 0x18f   :  { %v210_v47 = vor.u32 1.1754944e-38, %v209_v43  ;;  %vm208_vm11 = vcmp.eq.f32.partialorder %v207_v45, 8.507059e+37  ;;  %v378_v43 = vld [vmem:[#allocation6 + $0x268] sm:$0xff]  ;;  %v377_v45 = vld [vmem:[#allocation6 + $0x260] sm:$0xff] }
 0x193   :  { %v516_v40 = vpop.eup %515 }
 0x194   :  { %v199_v41 = vmul.f32 %v516_v40, %v197_v39  ;;  %vm204_vm8 = vweird.f32 %v516_v40  ;;  %v380_v39 = vld [vmem:[#allocation6 + $0x278] sm:$0xff] }
 0x195   :  { %vm205_vm10 = vmor %vm203_vm9, %vm204_vm8  ;;  %383 = vmatpush.msrb.mxu0 %v380_v39  ;;  %v448_v39 = vld [vmem:[#allocation6 + $0x2c0] sm:$0xff] }
 0x196   :  { %v200_v42 = vsub.f32 1.0, %v199_v41 }
 0x198   :  { %v201_v44 = vmul.f32 %v516_v40, %v200_v42 }
 0x19a   :  { %v202_v46 = vadd.f32 %v516_v40, %v201_v44 }
 0x19c   :  { %v206_v48 = vsel %vm205_vm10, %v516_v40, %v202_v46  ;;  %v379_v40 = vld [vmem:[#allocation6 + $0x270] sm:$0xff] }
 0x19d   :  { %v211_v49 = vsel %vm208_vm11, %v210_v47, %v206_v48  ;;  %384 = vmatpush.msrb.mxu0 %v379_v40  ;;  %v376_v47 = vld [vmem:[#allocation6 + $0x258] sm:$0xff] }
 0x19e   :  { %v212_v50 = vmul.f32 %v211_v49, %v674_v61  ;;  %v375_v49 = vld [vmem:[#allocation6 + $0x250] sm:$0xff] }
 0x19f   :  { %385 = vmatpush.msrb.mxu0 %v378_v43  ;;  %v446_v43 = vld [vmem:[#allocation6 + $0x2b0] sm:$0xff] }
 0x1a0   :  { %v213_v51 = vmul.f32 %v212_v50, %v176_v11 }
 0x1a1   :  { %386 = vmatpush.msrb.mxu0 %v377_v45  ;;  %v444_v45 = vld [vmem:[#allocation6 + $0x2a0] sm:$0xff] }
 0x1a2   :  { %249 = vmatmul.f32.vlgmr.msra.gmra.mxu2 %v213_v51  ;;  %v374_v51 = vld [vmem:[#allocation6 + $0x248] sm:$0xff] }
 0x1a3   :  { %387 = vmatpush.msrb.mxu0 %v376_v47 }
 0x1a5   :  { %388 = vmatpush.msrb.mxu0 %v375_v49 }
 0x1a7   :  { %389 = vmatpush.msrb.mxu0 %v374_v51 }
 0x1a9   :  { %390 = vmatpush.msrb.mxu0 %v373_v53 }
 0x1ab   :  { %391 = vmatpush.msrb.mxu0 %v372_v55 }
 0x1ad   :  { %392 = vmatpush.msrb.mxu0 %v371_v57 }
 0x225   :  { %v250_v58 = vpop.f32.mrf.mxu2 }
 0x226   :  { %v251_v60 = vadd.f32 %v505_v56, %v250_v58  ;;  %v370_v58 = vld [vmem:[#allocation6 + $0x228] sm:$0xff] }
 0x227   :  { %393 = vmatpush.msrb.mxu0 %v370_v58 }
 0x228   :  { %v253_v63 = vmul.f32 %v251_v60, %v251_v60 }
 0x229   :  { %394 = vmatpush.msrb.mxu0 %v369_v59 }
 0x22a   :  { %v254_v1 = vrot.slane %v253_v63, 4 }
 0x22c   :  { %v255_v3 = vadd.f32 %v254_v1, %v253_v63  ;;  %v367_v63 = vld [vmem:[#allocation6 + $0x210] sm:$0xff]  ;;  %v366_v1 = vld [vmem:[#allocation6 + $0x208] sm:$0xff] }
 0x22e   :  { %v256_v5 = vrot.slane %v255_v3, 2 }
 0x230   :  { %v257_v7 = vadd.f32 %v256_v5, %v255_v3  ;;  %v365_v3 = vld [vmem:[#allocation6 + $0x200] sm:$0xff] }
 0x232   :  { %v258_v9 = vrot.slane %v257_v7, 1 }
 0x234   :  { %v259_v11 = vadd.f32 %v258_v9, %v257_v7 }
 0x236   :  { %517 = vrsqrt.f32 %v259_v11  ;;  %vm267_vm12 = vcmp.eq.f32.partialorder %v259_v11, inf  ;;  %v270_v22 = vand.u32 2147483648, %v259_v11  ;;  %vm269_vm13 = vcmp.eq.f32.partialorder %v259_v11, 0.0 }
 0x23c   :  { %v518_v15 = vpop.eup %517 }
 0x23d   :  { %v261_v16 = vmul.f32 %v518_v15, %v259_v11 }
 0x23f   :  { %v262_v17 = vmul.f32 %v518_v15, %v261_v16 }
 0x241   :  { %v263_v18 = vmul.f32 0.5, %v262_v17 }
 0x243   :  { %v264_v19 = vsub.f32 1.5, %v263_v18 }
 0x245   :  { %v265_v20 = vmul.f32 %v518_v15, %v264_v19 }
 0x247   :  { %v266_v21 = vmul.f32 %v265_v20, %v259_v11 }
 0x249   :  { %v268_v23 = vsel %vm267_vm12, %v259_v11, %v266_v21 }
 0x24a   :  { %v271_v24 = vsel %vm269_vm13, %v270_v22, %v268_v23 }
 0x24b   :  { %v272_v25 = vmax.f32 %v271_v24, 1e-12  ;;  %v507_v24 = vld [vmem:[#allocation8 + $0x4] ss:$0 sm:$0xff] }
 0x24d   :  { %519 = vrcp.f32 %v272_v25  ;;  %v284_v29 = vand.u32 2147483648, %v272_v25  ;;  %v282_v31 = vand.u32 2147483647, %v272_v25  ;;  %vm278_vm15 = vweird.f32 %v272_v25 }
 0x24f   :  { %v285_v33 = vor.u32 1.1754944e-38, %v284_v29  ;;  %vm283_vm1 = vcmp.eq.f32.partialorder %v282_v31, 8.507059e+37  ;;  %v453_v29 = vld [vmem:[#allocation6 + $0x2e8] sm:$0xff]  ;;  %v452_v31 = vld [vmem:[#allocation6 + $0x2e0] sm:$0xff] }
 0x253   :  { %v520_v26 = vpop.eup %519 }
 0x254   :  { %v274_v27 = vmul.f32 %v520_v26, %v272_v25  ;;  %vm279_vm14 = vweird.f32 %v520_v26  ;;  %v455_v25 = vld [vmem:[#allocation6 + $0x2f8] sm:$0xff] }
 0x255   :  { %vm280_vm0 = vmor %vm278_vm15, %vm279_vm14  ;;  %458 = vmatpush.msrb.mxu1 %v455_v25 }
 0x256   :  { %v275_v28 = vsub.f32 1.0, %v274_v27 }
 0x258   :  { %v276_v30 = vmul.f32 %v520_v26, %v275_v28 }
 0x25a   :  { %v277_v32 = vadd.f32 %v520_v26, %v276_v30 }
 0x25c   :  { %v281_v34 = vsel %vm280_vm0, %v520_v26, %v277_v32  ;;  %v454_v26 = vld [vmem:[#allocation6 + $0x2f0] sm:$0xff] }
 0x25d   :  { %v286_v35 = vsel %vm283_vm1, %v285_v33, %v281_v34  ;;  %459 = vmatpush.msrb.mxu1 %v454_v26  ;;  %v451_v33 = vld [vmem:[#allocation6 + $0x2d8] sm:$0xff] }
 0x25e   :  { %v287_v36 = vmul.f32 %v286_v35, %v674_v61  ;;  %v450_v35 = vld [vmem:[#allocation6 + $0x2d0] sm:$0xff] }
 0x25f   :  { %460 = vmatpush.msrb.mxu1 %v453_v29 }
 0x260   :  { %v288_v37 = vmul.f32 %v287_v36, %v251_v60  ;;  %v368_v60 = vld [vmem:[#allocation6 + $0x218] sm:$0xff] }
 0x261   :  { %395 = vmatpush.msrb.mxu0 %v368_v60  ;;  %461 = vmatpush.msrb.mxu1 %v452_v31 }
 0x262   :  { %324 = vmatmul.f32.vlgmr.msra.gmra.mxu3 %v288_v37  ;;  %v449_v37 = vld [vmem:[#allocation6 + $0x2c8] sm:$0xff] }
 0x263   :  { %396 = vmatpush.msrb.mxu0 %v367_v63  ;;  %462 = vmatpush.msrb.mxu1 %v451_v33 }
 0x265   :  { %397 = vmatpush.msrb.mxu0 %v366_v1  ;;  %463 = vmatpush.msrb.mxu1 %v450_v35 }
 0x267   :  { %398 = vmatpush.msrb.mxu0 %v365_v3  ;;  %464 = vmatpush.msrb.mxu1 %v449_v37 }
 0x269   :  { %465 = vmatpush.msrb.mxu1 %v448_v39 }
 0x2e5   :  { %v325_v41 = vpop.f32.mrf.mxu3 }
 0x2e6   :  { %v679_v42 = vadd.f32 %v506_v38, %v325_v41  ;;  %v447_v41 = vld [vmem:[#allocation6 + $0x2b8] sm:$0xff] }
 0x2e7   :  { %466 = vmatpush.msrb.mxu1 %v447_v41 }
 0x2e8   :  { %v328_v44 = vmul.f32 %v679_v42, %v679_v42 }
 0x2e9   :  { %467 = vmatpush.msrb.mxu1 %v446_v43 }
 0x2ea   :  { %v329_v46 = vrot.slane %v328_v44, 4 }
 0x2ec   :  { %v330_v48 = vadd.f32 %v329_v46, %v328_v44  ;;  %v445_v44 = vld [vmem:[#allocation6 + $0x2a8] sm:$0xff]  ;;  %v443_v46 = vld [vmem:[#allocation6 + $0x298] sm:$0xff] }
 0x2ed   :  { %468 = vmatpush.msrb.mxu1 %v445_v44 }
 0x2ee   :  { %v331_v50 = vrot.slane %v330_v48, 2 }
 0x2ef   :  { %469 = vmatpush.msrb.mxu1 %v444_v45 }
 0x2f0   :  { %v332_v52 = vadd.f32 %v331_v50, %v330_v48  ;;  %v442_v48 = vld [vmem:[#allocation6 + $0x290] sm:$0xff]  ;;  %v441_v50 = vld [vmem:[#allocation6 + $0x288] sm:$0xff] }
 0x2f1   :  { %470 = vmatpush.msrb.mxu1 %v443_v46 }
 0x2f2   :  { %v333_v54 = vrot.slane %v332_v52, 1 }
 0x2f3   :  { %471 = vmatpush.msrb.mxu1 %v442_v48 }
 0x2f4   :  { %v334_v56 = vadd.f32 %v333_v54, %v332_v52  ;;  %v440_v52 = vld [vmem:[#allocation6 + $0x280] sm:$0xff] }
 0x2f5   :  { %472 = vmatpush.msrb.mxu1 %v441_v50 }
 0x2f6   :  { %521 = vrsqrt.f32 %v334_v56  ;;  %vm342_vm2 = vcmp.eq.f32.partialorder %v334_v56, inf  ;;  %v345_v8 = vand.u32 2147483648, %v334_v56  ;;  %vm344_vm3 = vcmp.eq.f32.partialorder %v334_v56, 0.0 }
 0x2f7   :  { %473 = vmatpush.msrb.mxu1 %v440_v52 }
 0x2fc   :  { %v522_v62 = vpop.eup %521 }
 0x2fd   :  { %v336_v0 = vmul.f32 %v522_v62, %v334_v56 }
 0x2ff   :  { %v337_v2 = vmul.f32 %v522_v62, %v336_v0 }
 0x301   :  { %v338_v4 = vmul.f32 0.5, %v337_v2 }
 0x303   :  { %v339_v5 = vsub.f32 1.5, %v338_v4 }
 0x305   :  { %v340_v6 = vmul.f32 %v522_v62, %v339_v5 }
 0x307   :  { %v341_v7 = vmul.f32 %v340_v6, %v334_v56 }
 0x309   :  { %v343_v9 = vsel %vm342_vm2, %v334_v56, %v341_v7 }
 0x30a   :  { %v346_v10 = vsel %vm344_vm3, %v345_v8, %v343_v9 }
 0x30b   :  { %v347_v11 = vmax.f32 %v346_v10, 1e-12  ;;  %v508_v10 = vld [vmem:[#allocation8 + $0x5] ss:$0 sm:$0xff] }
 0x30d   :  { %523 = vrcp.f32 %v347_v11  ;;  %v359_v15 = vand.u32 2147483648, %v347_v11  ;;  %v357_v17 = vand.u32 2147483647, %v347_v11  ;;  %vm353_vm5 = vweird.f32 %v347_v11 }
 0x30f   :  { %v360_v19 = vor.u32 1.1754944e-38, %v359_v15  ;;  %vm358_vm7 = vcmp.eq.f32.partialorder %v357_v17, 8.507059e+37 }
 0x313   :  { %v524_v12 = vpop.eup %523 }
 0x314   :  { %v349_v13 = vmul.f32 %v524_v12, %v347_v11  ;;  %vm354_vm4 = vweird.f32 %v524_v12 }
 0x315   :  { %vm355_vm6 = vmor %vm353_vm5, %vm354_vm4 }
 0x316   :  { %v350_v14 = vsub.f32 1.0, %v349_v13 }
 0x318   :  { %v351_v16 = vmul.f32 %v524_v12, %v350_v14 }
 0x31a   :  { %v352_v18 = vadd.f32 %v524_v12, %v351_v16 }
 0x31c   :  { %v356_v20 = vsel %vm355_vm6, %v524_v12, %v352_v18 }
 0x31d   :  { %v361_v21 = vsel %vm358_vm7, %v360_v19, %v356_v20 }
 0x31e   :  { %v362_v22 = vmul.f32 %v361_v21, %v674_v61 }
 0x320   :  { %v363_v23 = vmul.f32 %v362_v22, %v679_v42 }
 0x322   :  { %399 = vmatmul.f32.vlgmr.msrb.gmra.mxu0 %v363_v23 }
 0x39f   :  { %v400_v27 = vpop.f32.mrf.mxu0 }
 0x3a0   :  { %v685_v28 = vadd.f32 %v507_v24, %v400_v27 }
 0x3a2   :  { %v403_v30 = vmul.f32 %v685_v28, %v685_v28 }
 0x3a4   :  { %v404_v32 = vrot.slane %v403_v30, 4 }
 0x3a6   :  { %v405_v34 = vadd.f32 %v404_v32, %v403_v30 }
 0x3a8   :  { %v406_v36 = vrot.slane %v405_v34, 2 }
 0x3aa   :  { %v407_v38 = vadd.f32 %v406_v36, %v405_v34 }
 0x3ac   :  { %v408_v40 = vrot.slane %v407_v38, 1 }
 0x3ae   :  { %v409_v42 = vadd.f32 %v408_v40, %v407_v38 }
 0x3b0   :  { %525 = vrsqrt.f32 %v409_v42  ;;  %vm417_vm8 = vcmp.eq.f32.partialorder %v409_v42, inf  ;;  %v420_v57 = vand.u32 2147483648, %v409_v42  ;;  %vm419_vm9 = vcmp.eq.f32.partialorder %v409_v42, 0.0 }
 0x3b6   :  { %v526_v47 = vpop.eup %525 }
 0x3b7   :  { %v411_v49 = vmul.f32 %v526_v47, %v409_v42 }
 0x3b9   :  { %v412_v51 = vmul.f32 %v526_v47, %v411_v49 }
 0x3bb   :  { %v413_v53 = vmul.f32 0.5, %v412_v51 }
 0x3bd   :  { %v414_v54 = vsub.f32 1.5, %v413_v53 }
 0x3bf   :  { %v415_v55 = vmul.f32 %v526_v47, %v414_v54 }
 0x3c1   :  { %v416_v56 = vmul.f32 %v415_v55, %v409_v42 }
 0x3c3   :  { %v418_v58 = vsel %vm417_vm8, %v409_v42, %v416_v56 }
 0x3c4   :  { %v421_v59 = vsel %vm419_vm9, %v420_v57, %v418_v58 }
 0x3c5   :  { %v422_v60 = vmax.f32 %v421_v59, 1e-12 }
 0x3c7   :  { %527 = vrcp.f32 %v422_v60  ;;  %v434_v1 = vand.u32 2147483648, %v422_v60  ;;  %v432_v3 = vand.u32 2147483647, %v422_v60  ;;  %vm428_vm11 = vweird.f32 %v422_v60 }
 0x3c9   :  { %v435_v5 = vor.u32 1.1754944e-38, %v434_v1  ;;  %vm433_vm13 = vcmp.eq.f32.partialorder %v432_v3, 8.507059e+37 }
 0x3cd   :  { %v528_v62 = vpop.eup %527 }
 0x3ce   :  { %v424_v63 = vmul.f32 %v528_v62, %v422_v60  ;;  %vm429_vm10 = vweird.f32 %v528_v62 }
 0x3cf   :  { %vm430_vm12 = vmor %vm428_vm11, %vm429_vm10 }
 0x3d0   :  { %v425_v0 = vsub.f32 1.0, %v424_v63 }
 0x3d2   :  { %v426_v2 = vmul.f32 %v528_v62, %v425_v0 }
 0x3d4   :  { %v427_v4 = vadd.f32 %v528_v62, %v426_v2 }
 0x3d6   :  { %v431_v6 = vsel %vm430_vm12, %v528_v62, %v427_v4 }
 0x3d7   :  { %v436_v7 = vsel %vm433_vm13, %v435_v5, %v431_v6 }
 0x3d8   :  { %v437_v8 = vmul.f32 %v436_v7, %v674_v61 }
 0x3da   :  { %v438_v9 = vmul.f32 %v437_v8, %v685_v28 }
 0x3dc   :  { %474 = vmatmul.f32.vlgmr.msrb.gmra.mxu1 %v438_v9 }
 0x459   :  { %v475_v11 = vpop.f32.mrf.mxu1 }
 0x45a   :  { %v476_v12 = vadd.f32 %v508_v10, %v475_v11 }
 0x45c   :  { %478 = vst [vmem:[#allocation9] sm:$0xff] %v476_v12 }
 0x45d   :  { %489 = dma.vmem_to_hbm [thread:$0]  %s485_s5, 128, %s487_s8, [#allocation5]  }
 0x45e   :  { %629 = dma.done.wait [#allocation5], 128  }
 0x45f   :  { %630 = vsyncadd [#allocation5], 4294967168 }
 0x460   :  { %494 = vsyncpa [#allocation4], 1 }
 0x461   :  { %495 = vsyncpa [#allocation7], 1 }
 0x462   :  { %496 = vsyncpa [#allocation5], 1 }

</bundles_post_ra>
